<compile_context>
chip_gen: v7x
topology: tpu7x:2x2x1
jax: 0.10.0
libtpu: 0.0.40
codegen_flags: <defaults>
</compile_context>

<pallas_src>
import functools

import jax
import jax.numpy as jnp
from jax import lax
from jax.experimental import pallas as pl
from jax.experimental.pallas import tpu as pltpu


def _round_up(x, m):
    return ((x + m - 1) // m) * m


def _pick_tiling(batch, dim, *, max_lane_tile=512, vmem_budget=40 * 1024 * 1024):
    """Pick a lane-tile width so the double-buffered (batch, tile) blocks fit VMEM."""
    padded_dim = _round_up(dim, 128)
    # z and y blocks are (batch, tile_d) f32, each double-buffered by the
    # pipeline -> ~4 * batch * tile_d * 4 bytes of VMEM for the large buffers.
    per_lane_bytes = 16 * batch
    fit_tile = max(128, (vmem_budget // per_lane_bytes) // 128 * 128)
    tile_d = max(128, min(max_lane_tile, padded_dim, fit_tile))
    padded_dim = _round_up(padded_dim, tile_d)
    return padded_dim, tile_d
    # TODO(synk): if batch is so large that even a 128-lane tile overflows VMEM,
    # a two-pass (grid-over-batch accumulator) variant would be needed.


def _bn_flow_kernel(z_ref, gamma_ref, beta_ref,
                    y_ref, mean_ref, var_ref, logdet_ref, *, eps, batch):
    """One feature tile: full batch resident, reduce over the batch (sublane) axis."""
    z = z_ref[...]          # (B, Td) f32
    gamma = gamma_ref[...]  # (1, Td)
    beta = beta_ref[...]    # (1, Td)

    inv_b = jnp.float32(1.0 / batch)
    mean = jnp.sum(z, axis=0, keepdims=True) * inv_b              # (1, Td)
    diff = z - mean
    var = jnp.sum(diff * diff, axis=0, keepdims=True) * inv_b + jnp.float32(eps)

    inv_std = lax.rsqrt(var)                                      # EUP slot
    y_ref[...] = (gamma * inv_std) * diff + beta                  # (B, Td)

    mean_ref[...] = mean
    var_ref[...] = var
    # Spec: log_det = log(gamma) - 0.5*log(var + eps); `var` already carries +eps.
    logdet_ref[...] = jnp.log(gamma) - jnp.float32(0.5) * jnp.log(var + jnp.float32(eps))


def batch_norm_flow_forward(z, ldj, gamma, beta, r_mean, r_var,
                            *, momentum=0.95, eps=1e-5, lane_tile=512):
    """Forward (reverse=False) pass of BatchNormFlow.

    Returns (y, ldj_out, r_mean_new, r_var_new).
    """
    z = jnp.asarray(z, jnp.float32)
    ldj = jnp.asarray(ldj, jnp.float32)
    gamma = jnp.asarray(gamma, jnp.float32)
    beta = jnp.asarray(beta, jnp.float32)
    r_mean = jnp.asarray(r_mean, jnp.float32)
    r_var = jnp.asarray(r_var, jnp.float32)

    batch, dim = z.shape

    padded_dim, tile_d = _pick_tiling(batch, dim, max_lane_tile=lane_tile)
    pad = padded_dim - dim

    if pad:
        z_p = jnp.pad(z, ((0, 0), (0, pad)))
        gamma_p = jnp.pad(gamma, (0, pad), constant_values=1.0)   # log(1)=0: safe lanes
        beta_p = jnp.pad(beta, (0, pad))
    else:
        z_p, gamma_p, beta_p = z, gamma, beta
    gamma_p = gamma_p.reshape(1, padded_dim)
    beta_p = beta_p.reshape(1, padded_dim)

    grid = (padded_dim // tile_d,)

    # VMEM accounting: double-buffered z + y blocks dominate; small extras for
    # gamma/beta/mean/var/logdet tiles. Add headroom and keep under v7x's 64 MiB.
    big_bufs = 4 * batch * tile_d * 4
    vmem_limit = min(48 * 1024 * 1024, max(16 * 1024 * 1024, big_bufs + 4 * 1024 * 1024))

    cost = pl.CostEstimate(
        flops=int(batch * padded_dim * 8 + padded_dim * 8),
        transcendentals=int(padded_dim * 3),           # rsqrt + 2x log per feature
        bytes_accessed=int(4 * (2 * batch * padded_dim + 5 * padded_dim)),
    )

    y_p, b_mean_p, b_var_p, logdet_p = pl.pallas_call(
        functools.partial(_bn_flow_kernel, eps=float(eps), batch=batch),
        grid=grid,
        in_specs=[
            pl.BlockSpec((batch, tile_d), lambda j: (0, j)),   # z tile (full batch)
            pl.BlockSpec((1, tile_d), lambda j: (0, j)),       # gamma tile
            pl.BlockSpec((1, tile_d), lambda j: (0, j)),       # beta tile
        ],
        out_specs=(
            pl.BlockSpec((batch, tile_d), lambda j: (0, j)),   # y
            pl.BlockSpec((1, tile_d), lambda j: (0, j)),       # batch mean
            pl.BlockSpec((1, tile_d), lambda j: (0, j)),       # batch var (+eps)
            pl.BlockSpec((1, tile_d), lambda j: (0, j)),       # per-feature log_det
        ),
        out_shape=(
            jax.ShapeDtypeStruct((batch, padded_dim), jnp.float32),
            jax.ShapeDtypeStruct((1, padded_dim), jnp.float32),
            jax.ShapeDtypeStruct((1, padded_dim), jnp.float32),
            jax.ShapeDtypeStruct((1, padded_dim), jnp.float32),
        ),
        compiler_params=pltpu.CompilerParams(
            dimension_semantics=("parallel",),          # feature tiles are independent
            vmem_limit_bytes=int(vmem_limit),
        ),
        cost_estimate=cost,
    )(z_p, gamma_p, beta_p)

    y = y_p[:, :dim] if pad else y_p
    b_mean = b_mean_p[0, :dim]
    b_var = b_var_p[0, :dim]
    log_det = logdet_p[0, :dim]

    # O(dim) glue: scalar ldj update + momentum running-stat update (plain JAX).
    ldj_out = ldj + jnp.sum(log_det)
    r_mean_new = momentum * r_mean + (1.0 - momentum) * b_mean
    r_var_new = momentum * r_var + (1.0 - momentum) * b_var
    return y, ldj_out, r_mean_new, r_var_new


def _reference_forward(z, ldj, gamma, beta, r_mean, r_var, momentum=0.95, eps=1e-5):
    """Pure-JAX reference mirroring the PyTorch module (reverse=False)."""
    mean = z.mean(0)
    var = ((z - mean) ** 2).mean(0) + eps
    log_det = jnp.log(gamma) - 0.5 * jnp.log(var + eps)
    y = gamma * (z - mean) / jnp.sqrt(var) + beta
    ldj_out = ldj + jnp.sum(log_det, -1)
    r_mean_n = momentum * r_mean + (1 - momentum) * mean
    r_var_n = momentum * r_var + (1 - momentum) * var
    return y, ldj_out, r_mean_n, r_var_n


if __name__ == "__main__":
    key = jax.random.PRNGKey(0)
    k1, k2, k3, k4 = jax.random.split(key, 4)
    B, D = 8, 32   # (batch, hidden) as the forward implies

    z = jax.random.normal(k1, (B, D), dtype=jnp.float32)
    ldj = jax.random.normal(k2, (B,), dtype=jnp.float32)
    gamma = 0.5 + jax.random.uniform(k3, (D,), dtype=jnp.float32)   # positive
    beta = 0.1 * jax.random.normal(k4, (D,), dtype=jnp.float32)
    r_mean = jnp.zeros((D,), jnp.float32)
    r_var = jnp.ones((D,), jnp.float32)

    y, ldj_out, r_mean_n, r_var_n = batch_norm_flow_forward(
        z, ldj, gamma, beta, r_mean, r_var)
    y = jax.block_until_ready(y)
    ldj_out = jax.block_until_ready(ldj_out)

    y_ref, ldj_ref, rm_ref, rv_ref = _reference_forward(
        z, ldj, gamma, beta, r_mean, r_var)

    assert y.shape == (B, D) and ldj_out.shape == (B,)
    assert jnp.allclose(y, y_ref, rtol=1e-5, atol=1e-5)
    assert jnp.allclose(ldj_out, ldj_ref, rtol=1e-5, atol=1e-5)
    assert jnp.allclose(r_mean_n, rm_ref, rtol=1e-5, atol=1e-5)
    assert jnp.allclose(r_var_n, rv_ref, rtol=1e-5, atol=1e-5)

    print("KERNEL_OK")
</pallas_src>

<mosaic_0001>
module attributes {stable_mosaic.version = 11 : i64} {
  func.func @_bn_flow_kernel(%arg0: i32, %arg1: memref<8x128xf32, #tpu.memory_space<vmem>>, %arg2: memref<1x128xf32, #tpu.memory_space<vmem>>, %arg3: memref<1x128xf32, #tpu.memory_space<vmem>>, %arg4: memref<8x128xf32, #tpu.memory_space<vmem>>, %arg5: memref<1x128xf32, #tpu.memory_space<vmem>>, %arg6: memref<1x128xf32, #tpu.memory_space<vmem>>, %arg7: memref<1x128xf32, #tpu.memory_space<vmem>>) attributes {dimension_semantics = [#tpu.dimension_semantics<parallel>], iteration_bounds = array<i64: 1>, scalar_prefetch = 0 : i64, scratch_operands = 0 : i64, tpu.core_type = #tpu.core_type<tc>, window_params = [{transform_indices = @transform_0, window_bounds = array<i64: 8, 128>}, {transform_indices = @transform_1, window_bounds = array<i64: 1, 128>}, {transform_indices = @transform_2, window_bounds = array<i64: 1, 128>}, {transform_indices = @transform_3, window_bounds = array<i64: 8, 128>}, {transform_indices = @transform_4, window_bounds = array<i64: 1, 128>}, {transform_indices = @transform_5, window_bounds = array<i64: 1, 128>}, {transform_indices = @transform_6, window_bounds = array<i64: 1, 128>}]} {
    %c0 = arith.constant 0 : index
    %c0_0 = arith.constant 0 : index
    %0 = vector.load %arg1[%c0, %c0_0] : memref<8x128xf32, #tpu.memory_space<vmem>>, vector<8x128xf32>
    %c0_1 = arith.constant 0 : index
    %c0_2 = arith.constant 0 : index
    %1 = vector.load %arg2[%c0_1, %c0_2] : memref<1x128xf32, #tpu.memory_space<vmem>>, vector<1x128xf32>
    %c0_3 = arith.constant 0 : index
    %c0_4 = arith.constant 0 : index
    %2 = vector.load %arg3[%c0_3, %c0_4] : memref<1x128xf32, #tpu.memory_space<vmem>>, vector<1x128xf32>
    %cst = arith.constant dense<0.000000e+00> : vector<128xf32>
    %3 = vector.multi_reduction <add>, %0, %cst [0] : vector<8x128xf32> to vector<128xf32>
    %4 = vector.shape_cast %3 : vector<128xf32> to vector<1x128xf32>
    %cst_5 = arith.constant 1.250000e-01 : f32
    %5 = vector.broadcast %cst_5 : f32 to vector<1x128xf32>
    %6 = arith.mulf %4, %5 : vector<1x128xf32>
    %7 = vector.broadcast %6 : vector<1x128xf32> to vector<8x128xf32>
    %8 = arith.subf %0, %7 : vector<8x128xf32>
    %9 = arith.mulf %8, %8 : vector<8x128xf32>
    %cst_6 = arith.constant dense<0.000000e+00> : vector<128xf32>
    %10 = vector.multi_reduction <add>, %9, %cst_6 [0] : vector<8x128xf32> to vector<128xf32>
    %11 = vector.shape_cast %10 : vector<128xf32> to vector<1x128xf32>
    %cst_7 = arith.constant 1.250000e-01 : f32
    %12 = vector.broadcast %cst_7 : f32 to vector<1x128xf32>
    %13 = arith.mulf %11, %12 : vector<1x128xf32>
    %cst_8 = arith.constant 9.99999974E-6 : f32
    %14 = vector.broadcast %cst_8 : f32 to vector<1x128xf32>
    %15 = arith.addf %13, %14 : vector<1x128xf32>
    %16 = math.rsqrt %15 : vector<1x128xf32>
    %17 = arith.mulf %1, %16 : vector<1x128xf32>
    %18 = vector.broadcast %17 : vector<1x128xf32> to vector<8x128xf32>
    %19 = arith.mulf %18, %8 : vector<8x128xf32>
    %20 = vector.broadcast %2 : vector<1x128xf32> to vector<8x128xf32>
    %21 = arith.addf %19, %20 : vector<8x128xf32>
    %c0_9 = arith.constant 0 : index
    %c0_10 = arith.constant 0 : index
    %22 = vector.load %arg4[%c0_9, %c0_10] : memref<8x128xf32, #tpu.memory_space<vmem>>, vector<8x128xf32>
    tpu.vector_store %arg4[%c0_9, %c0_10], %21 {strides = array<i32>} : memref<8x128xf32, #tpu.memory_space<vmem>>, vector<8x128xf32>,
    %c0_11 = arith.constant 0 : index
    %c0_12 = arith.constant 0 : index
    %23 = vector.load %arg5[%c0_11, %c0_12] : memref<1x128xf32, #tpu.memory_space<vmem>>, vector<1x128xf32>
    tpu.vector_store %arg5[%c0_11, %c0_12], %6 {strides = array<i32>} : memref<1x128xf32, #tpu.memory_space<vmem>>, vector<1x128xf32>,
    %c0_13 = arith.constant 0 : index
    %c0_14 = arith.constant 0 : index
    %24 = vector.load %arg6[%c0_13, %c0_14] : memref<1x128xf32, #tpu.memory_space<vmem>>, vector<1x128xf32>
    tpu.vector_store %arg6[%c0_13, %c0_14], %15 {strides = array<i32>} : memref<1x128xf32, #tpu.memory_space<vmem>>, vector<1x128xf32>,
    %25 = math.log %1 : vector<1x128xf32>
    %cst_15 = arith.constant 9.99999974E-6 : f32
    %26 = vector.broadcast %cst_15 : f32 to vector<1x128xf32>
    %27 = arith.addf %15, %26 : vector<1x128xf32>
    %28 = math.log %27 : vector<1x128xf32>
    %cst_16 = arith.constant 5.000000e-01 : f32
    %29 = vector.broadcast %cst_16 : f32 to vector<1x128xf32>
    %30 = arith.mulf %29, %28 : vector<1x128xf32>
    %31 = arith.subf %25, %30 : vector<1x128xf32>
    %c0_17 = arith.constant 0 : index
    %c0_18 = arith.constant 0 : index
    %32 = vector.load %arg7[%c0_17, %c0_18] : memref<1x128xf32, #tpu.memory_space<vmem>>, vector<1x128xf32>
    tpu.vector_store %arg7[%c0_17, %c0_18], %31 {strides = array<i32>} : memref<1x128xf32, #tpu.memory_space<vmem>>, vector<1x128xf32>,
    return
  }
  func.func @transform_0(%arg0: i32) -> (i32, i32) {
    %c0_i32 = arith.constant 0 : i32
    %c0_i32_0 = arith.constant 0 : i32
    return %c0_i32, %arg0 : i32, i32
  }
  func.func @transform_1(%arg0: i32) -> (i32, i32) {
    %c0_i32 = arith.constant 0 : i32
    %c0_i32_0 = arith.constant 0 : i32
    return %c0_i32, %arg0 : i32, i32
  }
  func.func @transform_2(%arg0: i32) -> (i32, i32) {
    %c0_i32 = arith.constant 0 : i32
    %c0_i32_0 = arith.constant 0 : i32
    return %c0_i32, %arg0 : i32, i32
  }
  func.func @transform_3(%arg0: i32) -> (i32, i32) {
    %c0_i32 = arith.constant 0 : i32
    %c0_i32_0 = arith.constant 0 : i32
    return %c0_i32, %arg0 : i32, i32
  }
  func.func @transform_4(%arg0: i32) -> (i32, i32) {
    %c0_i32 = arith.constant 0 : i32
    %c0_i32_0 = arith.constant 0 : i32
    return %c0_i32, %arg0 : i32, i32
  }
  func.func @transform_5(%arg0: i32) -> (i32, i32) {
    %c0_i32 = arith.constant 0 : i32
    %c0_i32_0 = arith.constant 0 : i32
    return %c0_i32, %arg0 : i32, i32
  }
  func.func @transform_6(%arg0: i32) -> (i32, i32) {
    %c0_i32 = arith.constant 0 : i32
    %c0_i32_0 = arith.constant 0 : i32
    return %c0_i32, %arg0 : i32, i32
  }
}

</mosaic_0001>

<bundles_post_ra>
// kernel: tpu_custom_call.1
= control target key start
LH: loop header
LB: loop body
LE: loop exit
PB: predicated region body
PF: predicated region fallthrough
CT: control target
= control target key end

     0   :  { %12 = vsyncpa [#allocation3], 0  ;;  %s380_s0 = inlined_call_operand.hbm [shape: f32[8,128], index: 0, kind: input, shape index: {}]   ;;  %s381_s1 = inlined_call_operand.vmem [shape: f32[1,128], index: 1, kind: input, shape index: {}]   ;;  %s382_s2 = inlined_call_operand.vmem [shape: f32[1,128], index: 2, kind: input, shape index: {}]   ;;  %s383_s3 = inlined_call_operand.hbm [shape: f32[8,128], index: 3, kind: output, shape index: {0}]   ;;  %s384_s4 = inlined_call_operand.hbm [shape: f32[1,128], index: 4, kind: output, shape index: {1}]   ;;  %s385_s5 = inlined_call_operand.hbm [shape: f32[1,128], index: 5, kind: output, shape index: {2}]   ;;  %s386_s6 = inlined_call_operand.hbm [shape: f32[1,128], index: 6, kind: output, shape index: {3}]  }
   0x1   :  { %13 = vsyncpa [#allocation4], 0 }
   0x2   :  { %14 = vsyncpa [#allocation7], 0 }
   0x3   :  { %15 = vsyncpa [#allocation10], 0  ;;  %s266_s21 = smov [#allocation2]   ;;  %s148_s25 = scalar_lea.hbm %s380_s0, 128 }
   0x4   :  { %s22_s22 = sshll.u32 %s266_s21, 4  ;;  %p149_p0 = scmp.ne.s32.totalorder %s380_s0, %s148_s25  ;;  %s23_s22 = int_to_ptr.vmem [resolvable:$true] %s22_s22 }
   0x5   :  { %p152_p1 = scmp.lt.u32.totalorder %s148_s25, %s380_s0 }
   0x7   :  { %p154_p2 = pnand %p152_p1, %p149_p0 }
   0x9   :  { %157 = shalt.err (!%p154_p2)
}
   0xa   :  { %s158_s30 = scalar_lea.vmem %s23_s22, 128  ;;  %p163_p4 = scmp.lt.s32.totalorder %s23_s22, %s23_s22 }
   0xb   :  { %p159_p3 = scmp.ne.s32.totalorder %s23_s22, %s158_s30  ;;  %p164_p5 = scmp.lt.s32.totalorder %s158_s30, %s158_s30 }
   0xd   :  { %p165_p6 = por %p164_p5, %p163_p4 }
   0xf   :  { %p166_p7 = pnand %p165_p6, %p159_p3 }
  0x11   :  { %169 = shalt.err (!%p166_p7)
}
  0x12   :  { %25 = dma.hbm_to_vmem [thread:$0]  %s380_s0, 128, %s23_s22, [#allocation3]  }
  0x13   :  { %258 = dma.done.wait [#allocation3], 128  }
  0x14   :  { %259 = vsyncadd [#allocation3], 4294967168  ;;  %v33_v0 = vld [vmem:[#allocation2] sm:$0xff]  ;;  %s267_s9 = smov [#allocation6]  }
  0x15   :  { %v36_v1 = vrot.slane %v33_v0, 4  ;;  %s96_s10 = sshll.u32 %s267_s9, 4  ;;  %s97_s10 = int_to_ptr.vmem [resolvable:$true] %s96_s10 }
  0x16   :  { %s170_s11 = scalar_lea.vmem %s97_s10, 16  ;;  %s174_s12 = scalar_lea.vmem %s97_s10, 32 }
  0x17   :  { %v37_v2 = vadd.f32 %v36_v1, %v33_v0  ;;  %p171_p8 = scmp.ne.s32.totalorder %s97_s10, %s170_s11  ;;  %p175_p9 = scmp.lt.s32.totalorder %s97_s10, %s97_s10 }
  0x18   :  { %p176_p10 = scmp.lt.s32.totalorder %s174_s12, %s170_s11 }
  0x19   :  { %v38_v3 = vrot.slane %v37_v2, 2 }
  0x1a   :  { %p177_p11 = por %p176_p10, %p175_p9 }
  0x1b   :  { %v39_v4 = vadd.f32 %v38_v3, %v37_v2 }
  0x1c   :  { %p178_p12 = pnand %p177_p11, %p171_p8 }
  0x1d   :  { %v40_v5 = vrot.slane %v39_v4, 1 }
  0x1f   :  { %v41_v6 = vadd.f32 %v40_v5, %v39_v4 }
  0x21   :  { %v42_v7 = vmul.f32 0.125, %v41_v6 }
  0x23   :  { %v43_v8 = vsub.f32 %v33_v0, %v42_v7  ;;  %70 = vst [vmem:[#allocation6] sm:$0x1] %v42_v7 }
  0x24   :  { %181 = shalt.err (!%p178_p12)
}
  0x25   :  { %s182_s14 = scalar_lea.hbm %s384_s4, 16 }
  0x26   :  { %p183_p13 = scmp.ne.s32.totalorder %s384_s4, %s182_s14  ;;  %p186_p0 = scmp.lt.u32.totalorder %s182_s14, %s384_s4 }
  0x28   :  { %p188_p1 = pnand %p186_p0, %p183_p13 }
  0x2a   :  { %191 = shalt.err (!%p188_p1)
}
  0x2b   :  { %99 = dma.vmem_to_hbm [thread:$0]  %s97_s10, 16, %s384_s4, [#allocation7]   ;;  %v44_v9 = vmul.f32 %v43_v8, %v43_v8  ;;  %v34_v17 = vld [vmem:[%s381_s1] sm:$0x1]  ;;  %v56_v20 = vlaneseq }
  0x2c   :  { %s268_s21 = smov [#allocation8]   ;;  %142 = vlog2.f32 %v34_v17 }
  0x2d   :  { %v45_v10 = vrot.slane %v44_v9, 4  ;;  %s106_s22 = sshll.u32 %s268_s21, 4  ;;  %s107_s22 = int_to_ptr.vmem [resolvable:$true] %s106_s22 }
  0x2e   :  { %s192_s4 = scalar_lea.vmem %s107_s22, 16  ;;  %s196_s25 = scalar_lea.vmem %s107_s22, 32 }
  0x2f   :  { %v46_v11 = vadd.f32 %v45_v10, %v44_v9  ;;  %p193_p2 = scmp.ne.s32.totalorder %s107_s22, %s192_s4  ;;  %p197_p3 = scmp.lt.s32.totalorder %s107_s22, %s107_s22 }
  0x30   :  { %p198_p4 = scmp.lt.s32.totalorder %s196_s25, %s192_s4 }
  0x31   :  { %v47_v12 = vrot.slane %v46_v11, 2 }
  0x32   :  { %p199_p5 = por %p198_p4, %p197_p3 }
  0x33   :  { %v48_v13 = vadd.f32 %v47_v12, %v46_v11 }
  0x34   :  { %p200_p6 = pnand %p199_p5, %p193_p2 }
  0x35   :  { %v49_v14 = vrot.slane %v48_v13, 1 }
  0x37   :  { %v50_v15 = vadd.f32 %v49_v14, %v48_v13 }
  0x39   :  { %v51_v16 = vmul.f32 0.125, %v50_v15 }
  0x3b   :  { %v52_v18 = vadd.f32 1e-05, %v51_v16 }
  0x3d   :  { %144 = vrsqrt.f32 %v52_v18  ;;  %71 = vst [vmem:[#allocation8] sm:$0x1] %v52_v18  ;;  %v74_v19 = vadd.f32 1e-05, %v52_v18 }
  0x3e   :  { %203 = shalt.err (!%p200_p6)
}
  0x3f   :  { %s204_s28 = scalar_lea.hbm %s385_s5, 16 }
  0x40   :  { %p205_p7 = scmp.ne.s32.totalorder %s385_s5, %s204_s28  ;;  %p208_p8 = scmp.lt.u32.totalorder %s204_s28, %s385_s5 }
  0x42   :  { %p210_p9 = pnand %p208_p8, %p205_p7 }
  0x44   :  { %213 = shalt.err (!%p210_p9)
}
  0x45   :  { %109 = dma.vmem_to_hbm [thread:$0]  %s107_s22, 16, %s385_s5, [#allocation7]   ;;  %146 = vlog2.f32 %v74_v19  ;;  %v57_v21 = vshrl.u32 %v56_v20, 7  ;;  %v143_v22 = vpop.eup %142  ;;  %v136_v30 = vld [vmem:[%s382_s2] ss:$0 sm:$0xff] }
  0x46   :  { %v73_v28 = vmul.f32 0.6931472, %v143_v22  ;;  %s269_s12 = smov [#allocation5]   ;;  %s270_s13 = smov [#allocation9]  }
  0x47   :  { %v58_v23 = vsub.s32 0, %v57_v21  ;;  %v145_v24 = vpop.eup %144  ;;  %s86_s0 = sshll.u32 %s269_s12, 4  ;;  %s116_s5 = sshll.u32 %s270_s13, 4  ;;  %s87_s0 = int_to_ptr.vmem [resolvable:$true] %s86_s0  ;;  %s348_s5 = int_to_ptr.vmem [resolvable:$true] %s116_s5 }
  0x48   :  { %v54_v25 = vmul.f32 %v145_v24, %v34_v17  ;;  %s214_s14 = scalar_lea.vmem %s87_s0, 128  ;;  %p219_p11 = scmp.lt.s32.totalorder %s87_s0, %s87_s0 }
  0x49   :  { %p215_p10 = scmp.ne.s32.totalorder %s87_s0, %s214_s14  ;;  %p220_p12 = scmp.lt.s32.totalorder %s214_s14, %s214_s14 }
  0x4a   :  { %v59_v27 = vrot.slane %v54_v25, %v58_v23 }
  0x4b   :  { %p221_p13 = por %p220_p12, %p219_p11 }
  0x4c   :  { %v61_v31 = vmul.f32 %v59_v27, %v43_v8 }
  0x4d   :  { %p222_p0 = pnand %p221_p13, %p215_p10 }
  0x4e   :  { %v68_v33 = vadd.f32 %v136_v30, %v61_v31 }
  0x4f   :  { %v147_v26 = vpop.eup %146 }
  0x50   :  { %v76_v29 = vmul.f32 0.6931472, %v147_v26  ;;  %69 = vst [vmem:[#allocation5] sm:$0xff] %v68_v33 }
  0x52   :  { %v77_v32 = vmul.f32 0.5, %v76_v29 }
  0x54   :  { %v78_v34 = vsub.f32 %v73_v28, %v77_v32 }
  0x56   :  { %79 = vst [vmem:[#allocation9] sm:$0x1] %v78_v34 }
  0x57   :  { %225 = shalt.err (!%p222_p0)
}
  0x58   :  { %s226_s16 = scalar_lea.hbm %s383_s3, 128 }
  0x59   :  { %p227_p1 = scmp.ne.s32.totalorder %s383_s3, %s226_s16  ;;  %p230_p2 = scmp.lt.u32.totalorder %s226_s16, %s383_s3 }
  0x5b   :  { %p232_p3 = pnand %p230_p2, %p227_p1 }
  0x5d   :  { %235 = shalt.err (!%p232_p3)
}
  0x5e   :  { %89 = dma.vmem_to_hbm [thread:$0]  %s87_s0, 128, %s383_s3, [#allocation4]  }
  0x5f   :  { %s236_s23 = scalar_lea.vmem %s348_s5, 16  ;;  %s240_s24 = scalar_lea.vmem %s348_s5, 32 }
  0x60   :  { %p237_p4 = scmp.ne.s32.totalorder %s348_s5, %s236_s23  ;;  %p241_p5 = scmp.lt.s32.totalorder %s348_s5, %s348_s5 }
  0x61   :  { %p242_p6 = scmp.lt.s32.totalorder %s240_s24, %s236_s23 }
  0x63   :  { %p243_p7 = por %p242_p6, %p241_p5 }
  0x65   :  { %p244_p8 = pnand %p243_p7, %p237_p4 }
  0x67   :  { %247 = shalt.err (!%p244_p8)
}
  0x68   :  { %s248_s26 = scalar_lea.hbm %s386_s6, 16 }
  0x69   :  { %p249_p9 = scmp.ne.s32.totalorder %s386_s6, %s248_s26  ;;  %p252_p10 = scmp.lt.u32.totalorder %s248_s26, %s386_s6 }
  0x6b   :  { %p254_p11 = pnand %p252_p10, %p249_p9 }
  0x6d   :  { %257 = shalt.err (!%p254_p11)
}
  0x6e   :  { %119 = dma.vmem_to_hbm [thread:$0]  %s348_s5, 16, %s386_s6, [#allocation10]  }
  0x6f   :  { %260 = dma.done.wait [#allocation4], 128  }
  0x70   :  { %261 = vsyncadd [#allocation4], 4294967168 }
  0x71   :  { %262 = dma.done.wait [#allocation7], 32  }
  0x72   :  { %263 = vsyncadd [#allocation7], 4294967264 }
  0x73   :  { %264 = dma.done.wait [#allocation10], 16  }
  0x74   :  { %265 = vsyncadd [#allocation10], 4294967280 }
  0x75   :  { %132 = vsyncpa [#allocation3], 1 }
  0x76   :  { %133 = vsyncpa [#allocation4], 1 }
  0x77   :  { %134 = vsyncpa [#allocation7], 1 }
  0x78   :  { %135 = vsyncpa [#allocation10], 1 }

</bundles_post_ra>
